<compile_context>
chip_gen: v7x
topology: tpu7x:2x2x1
jax: 0.10.0
libtpu: 0.0.40
codegen_flags: <defaults>
</compile_context>

<pallas_src>
import functools
import math

import jax
import jax.numpy as jnp
from jax.experimental import pallas as pl
from jax.experimental.pallas import tpu as pltpu

EPS = 1e-6
NEG_INF = -1e9
BF16 = jnp.bfloat16


# ---------------------------------------------------------------------------
# helpers
# ---------------------------------------------------------------------------
def _const_spec(shape):
    """Grid-invariant (weight) input: constant index_map, single-buffered."""
    idx = lambda g: (0,) * len(shape)
    try:
        return pl.BlockSpec(shape, idx, pipeline_mode=pl.Buffered(1))
    except Exception:  # pipeline_mode / Buffered not available -> default (2x)
        return pl.BlockSpec(shape, idx)


def _vmem_budget_bytes(frac=0.75, fallback=48 * 2**20):
    """~75% of physical VMEM (v7x: 64 MiB/TC -> 48 MiB; v5e/v6e: 128 -> 96 MiB)."""
    try:
        return int(pltpu.get_tpu_info().vmem_capacity_bytes * frac)
    except Exception:
        return fallback


def _weight_bytes(p):
    return sum(int(v.size * v.dtype.itemsize) for v in p.values())


def _pick_tb(batch, seq, per_seq_bytes, fixed_bytes, budget, row_target=512):
    """Sequences per grid step. Candidates must keep every BlockSpec legal
    (TB == batch or TB % 8 == 0); fill ~row_target MXU rows; keep >=2 grid
    steps when that still leaves >=256 rows (v7x has 2 TensorCores); shrink
    while the (generous) VMEM estimate exceeds the budget."""
    if budget >= 64 * 2**20:           # v5e/v6e: plenty of VMEM, bigger tiles
        row_target = max(row_target, 1024)
    cands = sorted(d for d in range(1, batch + 1)
                   if batch % d == 0 and (d == batch or d % 8 == 0))
    fit = [d for d in cands if d * seq <= row_target]
    tb = max(fit) if fit else min(cands)
    if batch // tb == 1:
        smaller = [d for d in cands if d < tb and d * seq >= 256]
        if smaller:
            tb = max(smaller)
    while fixed_bytes + per_seq_bytes * tb > budget and any(d < tb for d in cands):
        tb = max(d for d in cands if d < tb)
    return tb


# ---------------------------------------------------------------------------
# Kernel 1: SoftRoutingBlock (attention pooling) -> routing weights alpha
# ---------------------------------------------------------------------------
def _soft_routing_kernel(x_ref, w1_ref, b1_ref, w2_ref, wm_ref, bm_ref,
                         ln_a_ref, ln_b_ref, wa_ref, wb_ref, bb_ref, out_ref):
    TB, L, C = x_ref.shape
    x = x_ref[...]                                            # (TB, L, C) f32

    # make_mask: sequence positions whose abs-sum is zero  -> (TB, L, 1)
    pad = jnp.sum(jnp.abs(x), axis=-1, keepdims=True) == 0.0

    # AttFlat.mlp.fc : Linear(C->C) + ReLU with TB*L rows on the MXU
    x2 = x.reshape(TB * L, C).astype(BF16)
    h1 = jnp.dot(x2, w1_ref[...], preferred_element_type=jnp.float32) + b1_ref[...]
    h1 = jnp.maximum(h1, 0.0).reshape(TB, L, C)               # f32

    # AttFlat.mlp.linear : Linear(C->1) as a VPU multiply + lane reduction.
    # Its bias is a constant shift that cancels in the softmax -> dropped.
    att = jnp.sum(h1 * w2_ref[...], axis=-1, keepdims=True)   # (TB, L, 1)

    # masked softmax over the sequence axis
    att = jnp.where(pad, NEG_INF, att)
    att = att - jnp.max(att, axis=1, keepdims=True)
    e = jnp.exp(att)
    att = e / jnp.sum(e, axis=1, keepdims=True)               # (TB, L, 1)

    # attention pooling (glimpses = 1) on the VPU: avoids TB M=1 matmuls
    pooled = jnp.sum(att * x, axis=1)                         # (TB, C) f32

    # AttFlat.linear_merge
    merged = jnp.dot(pooled.astype(BF16), wm_ref[...],
                     preferred_element_type=jnp.float32) + bm_ref[...]

    # custom LayerNorm: unbiased std, eps added to the std (not the variance)
    mean = jnp.mean(merged, axis=-1, keepdims=True)
    centered = merged - mean
    std = jnp.sqrt(jnp.sum(centered * centered, axis=-1, keepdims=True)
                   / (merged.shape[-1] - 1))
    y = ln_a_ref[...] * centered / (std + EPS) + ln_b_ref[...]    # (TB, C)

    # routing MLP: Linear(C->C//r, no bias) -> ReLU -> Linear(C//r->O, bias)
    h = jnp.maximum(jnp.dot(y.astype(BF16), wa_ref[...],
                            preferred_element_type=jnp.float32), 0.0)
    logits = jnp.dot(h.astype(BF16), wb_ref[...],
                     preferred_element_type=jnp.float32) + bb_ref[...]

    logits = logits - jnp.max(logits, axis=-1, keepdims=True)
    e2 = jnp.exp(logits)
    out_ref[...] = (e2 / jnp.sum(e2, axis=-1, keepdims=True)).astype(out_ref.dtype)


def soft_routing_block(x, p):
    """x: (B, L, C) f32. Returns routing weights alpha: (B, n_orders) f32."""
    B, L, C = x.shape
    O = p["wb"].shape[1]

    budget = _vmem_budget_bytes()
    wbytes = _weight_bytes(p)
    # double-buffered blocks + compiler intermediates (h1 / att / pooled / ...)
    per_seq = 2 * (L * C * 4 + O * 4) + 5 * L * C * 4 + 8 * C * 4
    fixed = 2 * wbytes + (4 << 20)
    TB = _pick_tb(B, L, per_seq, fixed, budget)

    grid_spec = pltpu.PrefetchScalarGridSpec(
        num_scalar_prefetch=0,
        grid=(B // TB,),
        in_specs=[
            pl.BlockSpec((TB, L, C), lambda g: (g, 0, 0)),            # x
            _const_spec(p["w1"].shape), _const_spec(p["b1"].shape),
            _const_spec(p["w2"].shape),
            _const_spec(p["wm"].shape), _const_spec(p["bm"].shape),
            _const_spec(p["ln_a"].shape), _const_spec(p["ln_b"].shape),
            _const_spec(p["wa"].shape),
            _const_spec(p["wb"].shape), _const_spec(p["bb"].shape),
        ],
        out_specs=pl.BlockSpec((TB, O), lambda g: (g, 0)),
    )
    return pl.pallas_call(
        _soft_routing_kernel,
        out_shape=jax.ShapeDtypeStruct((B, O), jnp.float32),
        grid_spec=grid_spec,
        compiler_params=pltpu.CompilerParams(
            dimension_semantics=("parallel",),
            vmem_limit_bytes=budget),
    )(x, p["w1"], p["b1"], p["w2"], p["wm"], p["bm"],
      p["ln_a"], p["ln_b"], p["wa"], p["wb"], p["bb"])


# ---------------------------------------------------------------------------
# Kernel 2: routed multi-head self-attention + linear_merge (TB-batched)
# ---------------------------------------------------------------------------
def _sa_attention_kernel(v_ref, k_ref, q_ref, masks_ref, alphas_ref,
                         wv_ref, bv_ref, wk_ref, bk_ref, wq_ref, bq_ref,
                         wm_ref, bm_ref, out_ref, acc_ref, *, num_heads):
    TB, L, C = q_ref.shape
    Dh = C // num_heads
    n_orders = masks_ref.shape[1]
    scale = 1.0 / math.sqrt(Dh)
    inv_L = 1.0 / L

    def proj(x_r, w_r, b_r):
        x2 = x_r[...].reshape(TB * L, C).astype(BF16)         # TB*L MXU rows
        return (jnp.dot(x2, w_r[...], preferred_element_type=jnp.float32)
                + b_r[...])

    vp = proj(v_ref, wv_ref, bv_ref).reshape(TB, L, C)        # f32
    kp = proj(k_ref, wk_ref, bk_ref).reshape(TB, L, C)
    # fold 1/sqrt(Dh) into the q projection (f32) -> no per-head (L,L) scaling
    qp = (proj(q_ref, wq_ref, bq_ref) * scale).reshape(TB, L, C)

    # hoisted out of the head loop: per-order mask bools and routing weights
    masks_all = masks_ref[...]                                # (TB, n_orders, L, L) int8
    mask_list = [masks_all[:, i] != 0 for i in range(n_orders)]
    alph = alphas_ref[...]                                    # (TB, 1, n_orders) f32
    a_list = [alph[:, :, i:i + 1] for i in range(n_orders)]   # (TB, 1, 1)

    for h in range(num_heads):                                # static unroll
        s0 = h * Dh
        qh = qp[:, :, s0:s0 + Dh].astype(BF16)
        kh = kp[:, :, s0:s0 + Dh].astype(BF16)
        vh = vp[:, :, s0:s0 + Dh].astype(BF16)

        scores = jnp.einsum('bqd,bkd->bqk', qh, kh,
                            preferred_element_type=jnp.float32)      # (TB, L, L)

        # routing_att with a shared exp: row-max/exp once per head; each order
        # only zeroes its masked entries, renormalizes and scales by alpha
        # (== torch.einsum('bl,blcnm->bcnm', alphas, att_list)); attention
        # dropout is identity in eval mode.
        m = jnp.max(scores, axis=-1, keepdims=True)
        e = jnp.exp(scores - m)                                       # (TB, L, L)
        att = jnp.zeros_like(scores)
        for i in range(n_orders):                             # static unroll
            ei = jnp.where(mask_list[i], 0.0, e)
            den = jnp.sum(ei, axis=-1, keepdims=True)                 # (TB, L, 1)
            w = a_list[i] / jnp.maximum(den, 1e-30)                   # (TB, L, 1)
            # fully-masked rows: masked_fill(-1e9)+softmax gives uniform 1/L
            fb = jnp.where(den > 0.0, 0.0, a_list[i] * inv_L)         # (TB, L, 1)
            att = att + ei * w + fb

        # per-head att @ V written into the (TB, L, C) accumulator scratch
        acc_ref[:, :, s0:s0 + Dh] = jnp.einsum(
            'bqk,bkd->bqd', att.astype(BF16), vh,
            preferred_element_type=jnp.float32)

    # single full-depth (K=C) linear_merge over TB*L rows
    merged = jnp.dot(acc_ref[...].reshape(TB * L, C).astype(BF16), wm_ref[...],
                     preferred_element_type=jnp.float32) + bm_ref[...]
    out_ref[...] = merged.reshape(TB, L, C).astype(out_ref.dtype)


def sa_attention(v, k, q, masks, alphas, p, *, num_heads):
    """v, k, q: (B, L, C) f32; masks: (B, n_orders, L, L) int8/int32 (nonzero =
    masked; int8 preferred -> 4x less DMA); alphas: (B, n_orders) f32.
    Returns atted: (B, L, C) f32."""
    B, L, C = q.shape
    n_orders = masks.shape[1]
    msize = masks.dtype.itemsize

    budget = _vmem_budget_bytes()
    wbytes = _weight_bytes(p)
    # double-buffered blocks (v/k/q/out/masks/alphas) + compiler intermediates
    per_seq = (2 * (4 * L * C * 4 + n_orders * L * L * msize + n_orders * 4)
               + 5 * L * C * 4                      # vp/kp/qp/acc/merged
               + (4 * 4 + n_orders) * L * L)        # scores/e/ei/att + mask bools
    fixed = 2 * wbytes + (4 << 20)
    TB = _pick_tb(B, L, per_seq, fixed, budget)

    # (B, 1, n_orders) layout: per-order (TB, 1, 1) routing weight becomes a
    # pure lane slice in-kernel (no relayout).
    alphas3 = alphas.reshape(B, 1, n_orders)

    grid_spec = pltpu.PrefetchScalarGridSpec(
        num_scalar_prefetch=0,
        grid=(B // TB,),
        in_specs=[
            pl.BlockSpec((TB, L, C), lambda g: (g, 0, 0)),            # v
            pl.BlockSpec((TB, L, C), lambda g: (g, 0, 0)),            # k
            pl.BlockSpec((TB, L, C), lambda g: (g, 0, 0)),            # q
            pl.BlockSpec((TB, n_orders, L, L), lambda g: (g, 0, 0, 0)),
            pl.BlockSpec((TB, 1, n_orders), lambda g: (g, 0, 0)),     # alphas
            _const_spec(p["wv"].shape), _const_spec(p["bv"].shape),
            _const_spec(p["wk"].shape), _const_spec(p["bk"].shape),
            _const_spec(p["wq"].shape), _const_spec(p["bq"].shape),
            _const_spec(p["wm"].shape), _const_spec(p["bm"].shape),
        ],
        out_specs=pl.BlockSpec((TB, L, C), lambda g: (g, 0, 0)),
        scratch_shapes=[pltpu.VMEM((TB, L, C), jnp.float32)],         # head acc
    )
    return pl.pallas_call(
        functools.partial(_sa_attention_kernel, num_heads=num_heads),
        out_shape=jax.ShapeDtypeStruct((B, L, C), jnp.float32),
        grid_spec=grid_spec,
        compiler_params=pltpu.CompilerParams(
            dimension_semantics=("parallel",),
            vmem_limit_bytes=budget),
    )(v, k, q, masks, alphas3,
      p["wv"], p["bv"], p["wk"], p["bk"], p["wq"], p["bq"], p["wm"], p["bm"])


def sa_routing_block_forward(v, k, q, masks, params, *, num_heads):
    """SARoutingBlock.forward (soft routing, attention pooling, eval mode)."""
    alphas = soft_routing_block(v, params["routing"])
    atted = sa_attention(v, k, q, masks, alphas, params["attn"],
                         num_heads=num_heads)
    return atted, alphas


# ---------------------------------------------------------------------------
# parameters / masks / pure-JAX references
# ---------------------------------------------------------------------------
def init_params(key, hidden, n_orders, reduction):
    """Deterministic synthetic parameters. Weights stored as (in, out);
    MXU weights in bf16, biases / LayerNorm / the C->1 row in f32."""
    C, O, R = hidden, n_orders, hidden // reduction
    ks = jax.random.split(key, 16)
    u = lambda kk, shape, fan: jax.random.uniform(
        kk, shape, jnp.float32, -1.0 / math.sqrt(fan), 1.0 / math.sqrt(fan))
    routing = {
        "w1": u(ks[0], (C, C), C).astype(BF16),   # AttFlat.mlp.fc.linear
        "b1": u(ks[1], (1, C), C),
        "w2": u(ks[2], (1, C), C),                # AttFlat.mlp.linear (C->1) row
        "wm": u(ks[3], (C, C), C).astype(BF16),   # AttFlat.linear_merge
        "bm": u(ks[4], (1, C), C),
        "ln_a": jnp.ones((1, C), jnp.float32),    # AttFlat.norm
        "ln_b": jnp.zeros((1, C), jnp.float32),
        "wa": u(ks[5], (C, R), C).astype(BF16),   # mlp[0] (no bias)
        "wb": u(ks[6], (R, O), R).astype(BF16),   # mlp[2]
        "bb": u(ks[7], (1, O), R),
    }
    attn = {
        "wv": u(ks[8], (C, C), C).astype(BF16), "bv": u(ks[9], (1, C), C),
        "wk": u(ks[10], (C, C), C).astype(BF16), "bk": u(ks[11], (1, C), C),
        "wq": u(ks[12], (C, C), C).astype(BF16), "bq": u(ks[13], (1, C), C),
        "wm": u(ks[14], (C, C), C).astype(BF16), "bm": u(ks[15], (1, C), C),
    }
    return {"routing": routing, "attn": attn}


def _build_masks(x, n_orders):
    """(B, n_orders, L, L) int8 masks (int8 -> 4x less DMA than int32):
    order 0 = padding-only; order o > 0 additionally restricts attention to a
    local window of radius o."""
    B, L, _ = x.shape
    pad = (jnp.sum(jnp.abs(x), axis=-1) == 0.0)              # (B, L) padded keys
    pad_kl = jnp.broadcast_to(pad[:, None, :], (B, L, L))
    dist = jnp.abs(jnp.arange(L)[:, None] - jnp.arange(L)[None, :])
    per_order = []
    for o in range(n_orders):
        m = pad_kl if o == 0 else jnp.logical_or(pad_kl, (dist > o)[None, :, :])
        per_order.append(m)
    return jnp.stack(per_order, axis=1).astype(jnp.int8)


def _routing_reference(x, p):
    """Pure-JAX SoftRoutingBlock reference (precision-matched to the kernel)."""
    mask = (jnp.sum(jnp.abs(x), axis=-1, keepdims=True) == 0.0)
    h1 = jnp.maximum(jnp.einsum('blc,cd->bld', x.astype(BF16), p["w1"],
                                preferred_element_type=jnp.float32) + p["b1"], 0.0)
    att = jnp.sum(h1 * p["w2"], axis=-1, keepdims=True)      # bias cancels
    att = jnp.where(mask, NEG_INF, att)
    att = jax.nn.softmax(att, axis=1)
    pooled = jnp.sum(att * x, axis=1)                        # f32 pooling
    merged = jnp.dot(pooled.astype(BF16), p["wm"],
                     preferred_element_type=jnp.float32) + p["bm"]
    mean = merged.mean(axis=-1, keepdims=True)
    c = merged - mean
    std = jnp.sqrt(jnp.sum(c * c, axis=-1, keepdims=True) / (merged.shape[-1] - 1))
    y = p["ln_a"] * c / (std + EPS) + p["ln_b"]
    h = jnp.maximum(jnp.dot(y.astype(BF16), p["wa"],
                            preferred_element_type=jnp.float32), 0.0)
    logits = jnp.dot(h.astype(BF16), p["wb"],
                     preferred_element_type=jnp.float32) + p["bb"]
    return jax.nn.softmax(logits, axis=-1)


def _sa_reference(v, k, q, masks, alphas, p, *, num_heads):
    """Pure-JAX routed multi-head attention reference (bf16 matmul operands)."""
    B, L, C = q.shape
    Dh = C // num_heads
    scale = 1.0 / math.sqrt(Dh)

    def proj(x, w, b):
        return jnp.einsum('blc,cd->bld', x.astype(BF16), w,
                          preferred_element_type=jnp.float32) + b

    def split(t):
        return t.reshape(B, L, num_heads, Dh).transpose(0, 2, 1, 3)

    vh = split(proj(v, p["wv"], p["bv"]))
    kh = split(proj(k, p["wk"], p["bk"]))
    qh = split(proj(q, p["wq"], p["bq"]) * scale)            # scale folded into q
    scores = jnp.einsum('bhqd,bhkd->bhqk', qh.astype(BF16), kh.astype(BF16),
                        preferred_element_type=jnp.float32)
    att = jnp.zeros_like(scores)
    for i in range(masks.shape[1]):
        m = (masks[:, i] != 0)[:, None, :, :]
        p_i = jax.nn.softmax(jnp.where(m, NEG_INF, scores), axis=-1)
        att = att + alphas[:, i][:, None, None, None] * p_i
    atted = jnp.einsum('bhqk,bhkd->bhqd', att.astype(BF16), vh.astype(BF16),
                       preferred_element_type=jnp.float32)
    atted = atted.transpose(0, 2, 1, 3).reshape(B, L, C)
    return jnp.einsum('blc,cd->bld', atted.astype(BF16), p["wm"],
                      preferred_element_type=jnp.float32) + p["bm"]


# ---------------------------------------------------------------------------
if __name__ == "__main__":
    key = jax.random.PRNGKey(0)
    k_v, k_k, k_q, k_p = jax.random.split(key, 4)

    # small SARoutingBlock config: HIDDEN_SIZE=32, MULTI_HEAD=4, len(ORDERS)=4
    B, L, C = 2, 8, 32
    NUM_HEADS, N_ORDERS, REDUCTION = 4, 4, 2

    v = jax.random.normal(k_v, (B, L, C), jnp.float32)
    k = jax.random.normal(k_k, (B, L, C), jnp.float32)
    q = jax.random.normal(k_q, (B, L, C), jnp.float32)
    # one padded sequence position so the routing mask path is exercised
    v = v.at[0, L - 1, :].set(0.0)

    masks = _build_masks(v, N_ORDERS)                    # (B, n_orders, L, L) int8
    params = init_params(k_p, C, N_ORDERS, REDUCTION)

    atted, alphas = sa_routing_block_forward(v, k, q, masks, params,
                                             num_heads=NUM_HEADS)
    atted, alphas = jax.block_until_ready((atted, alphas))

    ref_alphas = _routing_reference(v, params["routing"])
    ref_atted = _sa_reference(v, k, q, masks, ref_alphas, params["attn"],
                              num_heads=NUM_HEADS)

    assert alphas.shape == (B, N_ORDERS) and atted.shape == (B, L, C)
    assert jnp.allclose(jnp.sum(alphas, axis=-1), 1.0, atol=1e-4)
    assert jnp.allclose(alphas, ref_alphas, atol=2e-3, rtol=2e-3)
    assert jnp.allclose(atted, ref_atted, atol=5e-3, rtol=5e-3)
    print("KERNEL_OK")
</pallas_src>

<mosaic_0001>
module attributes {stable_mosaic.version = 11 : i64} {
  func.func @_soft_routing_kernel(%arg0: i32, %arg1: memref<2x8x32xf32, #tpu.memory_space<vmem>>, %arg2: memref<32x32xbf16, #tpu.memory_space<vmem>>, %arg3: memref<1x32xf32, #tpu.memory_space<vmem>>, %arg4: memref<1x32xf32, #tpu.memory_space<vmem>>, %arg5: memref<32x32xbf16, #tpu.memory_space<vmem>>, %arg6: memref<1x32xf32, #tpu.memory_space<vmem>>, %arg7: memref<1x32xf32, #tpu.memory_space<vmem>>, %arg8: memref<1x32xf32, #tpu.memory_space<vmem>>, %arg9: memref<32x16xbf16, #tpu.memory_space<vmem>>, %arg10: memref<16x4xbf16, #tpu.memory_space<vmem>>, %arg11: memref<1x4xf32, #tpu.memory_space<vmem>>, %arg12: memref<2x4xf32, #tpu.memory_space<vmem>>) attributes {dimension_semantics = [#tpu.dimension_semantics<parallel>], iteration_bounds = array<i64: 1>, scalar_prefetch = 0 : i64, scratch_operands = 0 : i64, tpu.core_type = #tpu.core_type<tc>, window_params = [{transform_indices = @transform_0, window_bounds = array<i64: 2, 8, 32>}, {pipeline_mode = #tpu.pipeline_mode<synchronous>, transform_indices = @transform_1, window_bounds = array<i64: 32, 32>}, {pipeline_mode = #tpu.pipeline_mode<synchronous>, transform_indices = @transform_2, window_bounds = array<i64: 1, 32>}, {pipeline_mode = #tpu.pipeline_mode<synchronous>, transform_indices = @transform_3, window_bounds = array<i64: 1, 32>}, {pipeline_mode = #tpu.pipeline_mode<synchronous>, transform_indices = @transform_4, window_bounds = array<i64: 32, 32>}, {pipeline_mode = #tpu.pipeline_mode<synchronous>, transform_indices = @transform_5, window_bounds = array<i64: 1, 32>}, {pipeline_mode = #tpu.pipeline_mode<synchronous>, transform_indices = @transform_6, window_bounds = array<i64: 1, 32>}, {pipeline_mode = #tpu.pipeline_mode<synchronous>, transform_indices = @transform_7, window_bounds = array<i64: 1, 32>}, {pipeline_mode = #tpu.pipeline_mode<synchronous>, transform_indices = @transform_8, window_bounds = array<i64: 32, 16>}, {pipeline_mode = #tpu.pipeline_mode<synchronous>, transform_indices = @transform_9, window_bounds = array<i64: 16, 4>}, {pipeline_mode = #tpu.pipeline_mode<synchronous>, transform_indices = @transform_10, window_bounds = array<i64: 1, 4>}, {transform_indices = @transform_11, window_bounds = array<i64: 2, 4>}]} {
    %c0 = arith.constant 0 : index
    %c0_0 = arith.constant 0 : index
    %c0_1 = arith.constant 0 : index
    %0 = vector.load %arg1[%c0, %c0_0, %c0_1] : memref<2x8x32xf32, #tpu.memory_space<vmem>>, vector<2x8x32xf32>
    %1 = math.absf %0 : vector<2x8x32xf32>
    %cst = arith.constant dense<0.000000e+00> : vector<2x8xf32>
    %2 = vector.multi_reduction <add>, %1, %cst [2] : vector<2x8x32xf32> to vector<2x8xf32>
    %3 = vector.shape_cast %2 : vector<2x8xf32> to vector<2x8x1xf32>
    %cst_2 = arith.constant 0.000000e+00 : f32
    %4 = vector.broadcast %cst_2 : f32 to vector<2x8x1xf32>
    %5 = arith.cmpf oeq, %3, %4 : vector<2x8x1xf32>
    %6 = vector.shape_cast %0 : vector<2x8x32xf32> to vector<16x32xf32>
    %7 = arith.truncf %6 : vector<16x32xf32> to vector<16x32xbf16>
    %c0_3 = arith.constant 0 : index
    %c0_4 = arith.constant 0 : index
    %8 = vector.load %arg2[%c0_3, %c0_4] : memref<32x32xbf16, #tpu.memory_space<vmem>>, vector<32x32xbf16>
    %cst_5 = arith.constant dense<0.000000e+00> : vector<16x32xf32>
    %9 = tpu.matmul %7, %8, %cst_5 {dimension_numbers = #tpu.dot_dimension_numbers<[1], [0], [0], [1], [0, 0, 1, 1], [], []>} : vector<16x32xbf16>, vector<32x32xbf16>, vector<16x32xf32> -> vector<16x32xf32>
    %c0_6 = arith.constant 0 : index
    %c0_7 = arith.constant 0 : index
    %10 = vector.load %arg3[%c0_6, %c0_7] : memref<1x32xf32, #tpu.memory_space<vmem>>, vector<1x32xf32>
    %11 = vector.broadcast %10 : vector<1x32xf32> to vector<16x32xf32>
    %12 = arith.addf %9, %11 : vector<16x32xf32>
    %cst_8 = arith.constant 0.000000e+00 : f32
    %13 = vector.broadcast %cst_8 : f32 to vector<16x32xf32>
    %14 = arith.maximumf %12, %13 : vector<16x32xf32>
    %15 = vector.shape_cast %14 : vector<16x32xf32> to vector<2x8x32xf32>
    %c0_9 = arith.constant 0 : index
    %c0_10 = arith.constant 0 : index
    %16 = vector.load %arg4[%c0_9, %c0_10] : memref<1x32xf32, #tpu.memory_space<vmem>>, vector<1x32xf32>
    %17 = vector.shape_cast %16 : vector<1x32xf32> to vector<1x1x32xf32>
    %18 = vector.broadcast %17 : vector<1x1x32xf32> to vector<2x8x32xf32>
    %19 = arith.mulf %15, %18 : vector<2x8x32xf32>
    %cst_11 = arith.constant dense<0.000000e+00> : vector<2x8xf32>
    %20 = vector.multi_reduction <add>, %19, %cst_11 [2] : vector<2x8x32xf32> to vector<2x8xf32>
    %21 = vector.shape_cast %20 : vector<2x8xf32> to vector<2x8x1xf32>
    %cst_12 = arith.constant -1.000000e+09 : f32
    %22 = vector.broadcast %cst_12 : f32 to vector<2x8x1xf32>
    %23 = arith.select %5, %22, %21 : vector<2x8x1xi1>, vector<2x8x1xf32>
    %cst_13 = arith.constant dense<0xFF800000> : vector<2x1xf32>
    %24 = vector.multi_reduction <maximumf>, %23, %cst_13 [1] : vector<2x8x1xf32> to vector<2x1xf32>
    %25 = vector.shape_cast %24 : vector<2x1xf32> to vector<2x1x1xf32>
    %26 = vector.broadcast %25 : vector<2x1x1xf32> to vector<2x8x1xf32>
    %27 = arith.subf %23, %26 : vector<2x8x1xf32>
    %28 = math.exp %27 : vector<2x8x1xf32>
    %cst_14 = arith.constant dense<0.000000e+00> : vector<2x1xf32>
    %29 = vector.multi_reduction <add>, %28, %cst_14 [1] : vector<2x8x1xf32> to vector<2x1xf32>
    %30 = vector.shape_cast %29 : vector<2x1xf32> to vector<2x1x1xf32>
    %31 = vector.broadcast %30 : vector<2x1x1xf32> to vector<2x8x1xf32>
    %32 = arith.divf %28, %31 : vector<2x8x1xf32>
    %33 = vector.broadcast %32 : vector<2x8x1xf32> to vector<2x8x32xf32>
    %34 = arith.mulf %33, %0 : vector<2x8x32xf32>
    %cst_15 = arith.constant dense<0.000000e+00> : vector<2x32xf32>
    %35 = vector.multi_reduction <add>, %34, %cst_15 [1] : vector<2x8x32xf32> to vector<2x32xf32>
    %36 = arith.truncf %35 : vector<2x32xf32> to vector<2x32xbf16>
    %c0_16 = arith.constant 0 : index
    %c0_17 = arith.constant 0 : index
    %37 = vector.load %arg5[%c0_16, %c0_17] : memref<32x32xbf16, #tpu.memory_space<vmem>>, vector<32x32xbf16>
    %cst_18 = arith.constant dense<0.000000e+00> : vector<2x32xf32>
    %38 = tpu.matmul %36, %37, %cst_18 {dimension_numbers = #tpu.dot_dimension_numbers<[1], [0], [0], [1], [0, 0, 1, 1], [], []>} : vector<2x32xbf16>, vector<32x32xbf16>, vector<2x32xf32> -> vector<2x32xf32>
    %c0_19 = arith.constant 0 : index
    %c0_20 = arith.constant 0 : index
    %39 = vector.load %arg6[%c0_19, %c0_20] : memref<1x32xf32, #tpu.memory_space<vmem>>, vector<1x32xf32>
    %40 = vector.broadcast %39 : vector<1x32xf32> to vector<2x32xf32>
    %41 = arith.addf %38, %40 : vector<2x32xf32>
    %cst_21 = arith.constant dense<0.000000e+00> : vector<2xf32>
    %42 = vector.multi_reduction <add>, %41, %cst_21 [1] : vector<2x32xf32> to vector<2xf32>
    %43 = vector.shape_cast %42 : vector<2xf32> to vector<2x1xf32>
    %cst_22 = arith.constant 3.200000e+01 : f32
    %44 = vector.broadcast %cst_22 : f32 to vector<2x1xf32>
    %45 = arith.divf %43, %44 : vector<2x1xf32>
    %46 = vector.broadcast %45 : vector<2x1xf32> to vector<2x32xf32>
    %47 = arith.subf %41, %46 : vector<2x32xf32>
    %48 = arith.mulf %47, %47 : vector<2x32xf32>
    %cst_23 = arith.constant dense<0.000000e+00> : vector<2xf32>
    %49 = vector.multi_reduction <add>, %48, %cst_23 [1] : vector<2x32xf32> to vector<2xf32>
    %50 = vector.shape_cast %49 : vector<2xf32> to vector<2x1xf32>
    %cst_24 = arith.constant 3.100000e+01 : f32
    %51 = vector.broadcast %cst_24 : f32 to vector<2x1xf32>
    %52 = arith.divf %50, %51 : vector<2x1xf32>
    %53 = math.sqrt %52 : vector<2x1xf32>
    %c0_25 = arith.constant 0 : index
    %c0_26 = arith.constant 0 : index
    %54 = vector.load %arg7[%c0_25, %c0_26] : memref<1x32xf32, #tpu.memory_space<vmem>>, vector<1x32xf32>
    %55 = vector.broadcast %54 : vector<1x32xf32> to vector<2x32xf32>
    %56 = arith.mulf %55, %47 : vector<2x32xf32>
    %cst_27 = arith.constant 9.99999997E-7 : f32
    %57 = vector.broadcast %cst_27 : f32 to vector<2x1xf32>
    %58 = arith.addf %53, %57 : vector<2x1xf32>
    %59 = vector.broadcast %58 : vector<2x1xf32> to vector<2x32xf32>
    %60 = arith.divf %56, %59 : vector<2x32xf32>
    %c0_28 = arith.constant 0 : index
    %c0_29 = arith.constant 0 : index
    %61 = vector.load %arg8[%c0_28, %c0_29] : memref<1x32xf32, #tpu.memory_space<vmem>>, vector<1x32xf32>
    %62 = vector.broadcast %61 : vector<1x32xf32> to vector<2x32xf32>
    %63 = arith.addf %60, %62 : vector<2x32xf32>
    %64 = arith.truncf %63 : vector<2x32xf32> to vector<2x32xbf16>
    %c0_30 = arith.constant 0 : index
    %c0_31 = arith.constant 0 : index
    %65 = vector.load %arg9[%c0_30, %c0_31] : memref<32x16xbf16, #tpu.memory_space<vmem>>, vector<32x16xbf16>
    %cst_32 = arith.constant dense<0.000000e+00> : vector<2x16xf32>
    %66 = tpu.matmul %64, %65, %cst_32 {dimension_numbers = #tpu.dot_dimension_numbers<[1], [0], [0], [1], [0, 0, 1, 1], [], []>} : vector<2x32xbf16>, vector<32x16xbf16>, vector<2x16xf32> -> vector<2x16xf32>
    %cst_33 = arith.constant 0.000000e+00 : f32
    %67 = vector.broadcast %cst_33 : f32 to vector<2x16xf32>
    %68 = arith.maximumf %66, %67 : vector<2x16xf32>
    %69 = arith.truncf %68 : vector<2x16xf32> to vector<2x16xbf16>
    %c0_34 = arith.constant 0 : index
    %c0_35 = arith.constant 0 : index
    %70 = vector.load %arg10[%c0_34, %c0_35] : memref<16x4xbf16, #tpu.memory_space<vmem>>, vector<16x4xbf16>
    %cst_36 = arith.constant dense<0.000000e+00> : vector<2x4xf32>
    %71 = tpu.matmul %69, %70, %cst_36 {dimension_numbers = #tpu.dot_dimension_numbers<[1], [0], [0], [1], [0, 0, 1, 1], [], []>} : vector<2x16xbf16>, vector<16x4xbf16>, vector<2x4xf32> -> vector<2x4xf32>
    %c0_37 = arith.constant 0 : index
    %c0_38 = arith.constant 0 : index
    %72 = vector.load %arg11[%c0_37, %c0_38] : memref<1x4xf32, #tpu.memory_space<vmem>>, vector<1x4xf32>
    %73 = vector.broadcast %72 : vector<1x4xf32> to vector<2x4xf32>
    %74 = arith.addf %71, %73 : vector<2x4xf32>
    %cst_39 = arith.constant dense<0xFF800000> : vector<2xf32>
    %75 = vector.multi_reduction <maximumf>, %74, %cst_39 [1] : vector<2x4xf32> to vector<2xf32>
    %76 = vector.shape_cast %75 : vector<2xf32> to vector<2x1xf32>
    %77 = vector.broadcast %76 : vector<2x1xf32> to vector<2x4xf32>
    %78 = arith.subf %74, %77 : vector<2x4xf32>
    %79 = math.exp %78 : vector<2x4xf32>
    %cst_40 = arith.constant dense<0.000000e+00> : vector<2xf32>
    %80 = vector.multi_reduction <add>, %79, %cst_40 [1] : vector<2x4xf32> to vector<2xf32>
    %81 = vector.shape_cast %80 : vector<2xf32> to vector<2x1xf32>
    %82 = vector.broadcast %81 : vector<2x1xf32> to vector<2x4xf32>
    %83 = arith.divf %79, %82 : vector<2x4xf32>
    %c0_41 = arith.constant 0 : index
    %c0_42 = arith.constant 0 : index
    %84 = vector.load %arg12[%c0_41, %c0_42] : memref<2x4xf32, #tpu.memory_space<vmem>>, vector<2x4xf32>
    tpu.vector_store %arg12[%c0_41, %c0_42], %83 {strides = array<i32>} : memref<2x4xf32, #tpu.memory_space<vmem>>, vector<2x4xf32>,
    return
  }
  func.func @transform_0(%arg0: i32) -> (i32, i32, i32) {
    %c0_i32 = arith.constant 0 : i32
    %c0_i32_0 = arith.constant 0 : i32
    %c0_i32_1 = arith.constant 0 : i32
    return %arg0, %c0_i32, %c0_i32_0 : i32, i32, i32
  }
  func.func @transform_1(%arg0: i32) -> (i32, i32) {
    %c0_i32 = arith.constant 0 : i32
    %c0_i32_0 = arith.constant 0 : i32
    %c0_i32_1 = arith.constant 0 : i32
    return %c0_i32, %c0_i32_0 : i32, i32
  }
  func.func @transform_2(%arg0: i32) -> (i32, i32) {
    %c0_i32 = arith.constant 0 : i32
    %c0_i32_0 = arith.constant 0 : i32
    %c0_i32_1 = arith.constant 0 : i32
    return %c0_i32, %c0_i32_0 : i32, i32
  }
  func.func @transform_3(%arg0: i32) -> (i32, i32) {
    %c0_i32 = arith.constant 0 : i32
    %c0_i32_0 = arith.constant 0 : i32
    %c0_i32_1 = arith.constant 0 : i32
    return %c0_i32, %c0_i32_0 : i32, i32
  }
  func.func @transform_4(%arg0: i32) -> (i32, i32) {
    %c0_i32 = arith.constant 0 : i32
    %c0_i32_0 = arith.constant 0 : i32
    %c0_i32_1 = arith.constant 0 : i32
    return %c0_i32, %c0_i32_0 : i32, i32
  }
  func.func @transform_5(%arg0: i32) -> (i32, i32) {
    %c0_i32 = arith.constant 0 : i32
    %c0_i32_0 = arith.constant 0 : i32
    %c0_i32_1 = arith.constant 0 : i32
    return %c0_i32, %c0_i32_0 : i32, i32
  }
  func.func @transform_6(%arg0: i32) -> (i32, i32) {
    %c0_i32 = arith.constant 0 : i32
    %c0_i32_0 = arith.constant 0 : i32
    %c0_i32_1 = arith.constant 0 : i32
    return %c0_i32, %c0_i32_0 : i32, i32
  }
  func.func @transform_7(%arg0: i32) -> (i32, i32) {
    %c0_i32 = arith.constant 0 : i32
    %c0_i32_0 = arith.constant 0 : i32
    %c0_i32_1 = arith.constant 0 : i32
    return %c0_i32, %c0_i32_0 : i32, i32
  }
  func.func @transform_8(%arg0: i32) -> (i32, i32) {
    %c0_i32 = arith.constant 0 : i32
    %c0_i32_0 = arith.constant 0 : i32
    %c0_i32_1 = arith.constant 0 : i32
    return %c0_i32, %c0_i32_0 : i32, i32
  }
  func.func @transform_9(%arg0: i32) -> (i32, i32) {
    %c0_i32 = arith.constant 0 : i32
    %c0_i32_0 = arith.constant 0 : i32
    %c0_i32_1 = arith.constant 0 : i32
    return %c0_i32, %c0_i32_0 : i32, i32
  }
  func.func @transform_10(%arg0: i32) -> (i32, i32) {
    %c0_i32 = arith.constant 0 : i32
    %c0_i32_0 = arith.constant 0 : i32
    %c0_i32_1 = arith.constant 0 : i32
    return %c0_i32, %c0_i32_0 : i32, i32
  }
  func.func @transform_11(%arg0: i32) -> (i32, i32) {
    %c0_i32 = arith.constant 0 : i32
    %c0_i32_0 = arith.constant 0 : i32
    return %arg0, %c0_i32 : i32, i32
  }
}

</mosaic_0001>

<bundles_post_ra>
// kernel: tpu_custom_call.1
= control target key start
LH: loop header
LB: loop body
LE: loop exit
PB: predicated region body
PF: predicated region fallthrough
CT: control target
= control target key end

     0   :  { %16 = vsyncpa [#allocation3], 0  ;;  %s905_s0 = inlined_call_operand.vmem [shape: f32[2,8,32], index: 0, kind: input, shape index: {}]   ;;  %s906_s1 = inlined_call_operand.vmem [shape: bf16[32,32], index: 1, kind: input, shape index: {}]   ;;  %s907_s2 = inlined_call_operand.hbm [shape: f32[1,32], index: 2, kind: input, shape index: {}]   ;;  %s908_s3 = inlined_call_operand.hbm [shape: f32[1,32], index: 3, kind: input, shape index: {}]   ;;  %s909_s4 = inlined_call_operand.vmem [shape: bf16[32,32], index: 4, kind: input, shape index: {}]   ;;  %s910_s5 = inlined_call_operand.hbm [shape: f32[1,32], index: 5, kind: input, shape index: {}]   ;;  %s911_s6 = inlined_call_operand.hbm [shape: f32[1,32], index: 6, kind: input, shape index: {}]   ;;  %s912_s7 = inlined_call_operand.vmem [shape: f32[1,32], index: 7, kind: input, shape index: {}]   ;;  %s913_s8 = inlined_call_operand.vmem [shape: bf16[32,16], index: 8, kind: input, shape index: {}]   ;;  %s914_s9 = inlined_call_operand.vmem [shape: bf16[16,4], index: 9, kind: input, shape index: {}]   ;;  %s915_s10 = inlined_call_operand.vmem [shape: f32[1,4], index: 10, kind: input, shape index: {}]   ;;  %s916_s11 = inlined_call_operand.hbm [shape: f32[2,4], index: 11, kind: output, shape index: {}]  }
   0x1   :  { %17 = vsyncpa [#allocation6], 0 }
   0x2   :  { %18 = vsyncpa [#allocation9], 0 }
   0x3   :  { %19 = vsyncpa [#allocation4], 0  ;;  %s708_s17 = smov [#allocation5]   ;;  %s709_s19 = smov [#allocation2]  }
   0x4   :  { %s40_s18 = sshll.u32 %s708_s17, 4  ;;  %s30_s20 = sshll.u32 %s709_s19, 4  ;;  %s41_s18 = int_to_ptr.vmem [resolvable:$true] %s40_s18  ;;  %s31_s20 = int_to_ptr.vmem [resolvable:$true] %s30_s20 }
   0x5   :  { %s590_s23 = scalar_lea.hbm %s908_s3, 16 }
   0x6   :  { %p591_p0 = scmp.ne.s32.totalorder %s908_s3, %s590_s23  ;;  %p594_p1 = scmp.lt.u32.totalorder %s590_s23, %s908_s3 }
   0x8   :  { %p596_p2 = pnand %p594_p1, %p591_p0 }
   0xa   :  { %599 = shalt.err (!%p596_p2)
}
   0xb   :  { %s600_s28 = scalar_lea.vmem %s41_s18, 16  ;;  %s604_s29 = scalar_lea.vmem %s41_s18, 32 }
   0xc   :  { %p601_p3 = scmp.ne.s32.totalorder %s41_s18, %s600_s28  ;;  %p605_p4 = scmp.lt.s32.totalorder %s41_s18, %s41_s18 }
   0xd   :  { %p606_p5 = scmp.lt.s32.totalorder %s604_s29, %s600_s28 }
   0xf   :  { %p607_p6 = por %p606_p5, %p605_p4 }
  0x11   :  { %p608_p7 = pnand %p607_p6, %p601_p3 }
  0x13   :  { %611 = shalt.err (!%p608_p7)
}
  0x14   :  { %43 = dma.hbm_to_vmem [thread:$0]  %s908_s3, 16, %s41_s18, [#allocation6]  }
  0x15   :  { %s612_s15 = scalar_lea.hbm %s907_s2, 16 }
  0x16   :  { %p613_p8 = scmp.ne.s32.totalorder %s907_s2, %s612_s15  ;;  %p616_p9 = scmp.lt.u32.totalorder %s612_s15, %s907_s2 }
  0x18   :  { %p618_p10 = pnand %p616_p9, %p613_p8 }
  0x1a   :  { %621 = shalt.err (!%p618_p10)
}
  0x1b   :  { %s622_s22 = scalar_lea.vmem %s31_s20, 16  ;;  %s626_s23 = scalar_lea.vmem %s31_s20, 32 }
  0x1c   :  { %p623_p11 = scmp.ne.s32.totalorder %s31_s20, %s622_s22  ;;  %p627_p12 = scmp.lt.s32.totalorder %s31_s20, %s31_s20 }
  0x1d   :  { %p628_p13 = scmp.lt.s32.totalorder %s626_s23, %s622_s22 }
  0x1f   :  { %p629_p0 = por %p628_p13, %p627_p12 }
  0x21   :  { %p630_p1 = pnand %p629_p0, %p623_p11 }
  0x23   :  { %633 = shalt.err (!%p630_p1)
}
  0x24   :  { %33 = dma.hbm_to_vmem [thread:$0]  %s907_s2, 16, %s31_s20, [#allocation3]  }
  0x25   :  { %s710_s24 = smov [#allocation7]   ;;  %s711_s26 = smov [#allocation8]  }
  0x26   :  { %s52_s25 = sshll.u32 %s710_s24, 4  ;;  %s62_s27 = sshll.u32 %s711_s26, 4  ;;  %s53_s25 = int_to_ptr.vmem [resolvable:$true] %s52_s25  ;;  %s63_s27 = int_to_ptr.vmem [resolvable:$true] %s62_s27 }
  0x27   :  { %s634_s30 = scalar_lea.hbm %s910_s5, 16 }
  0x28   :  { %p635_p2 = scmp.ne.s32.totalorder %s910_s5, %s634_s30  ;;  %p638_p3 = scmp.lt.u32.totalorder %s634_s30, %s910_s5 }
  0x2a   :  { %p640_p4 = pnand %p638_p3, %p635_p2 }
  0x2c   :  { %643 = shalt.err (!%p640_p4)
}
  0x2d   :  { %s644_s2 = scalar_lea.vmem %s53_s25, 16  ;;  %s648_s20 = scalar_lea.vmem %s53_s25, 32 }
  0x2e   :  { %p645_p5 = scmp.ne.s32.totalorder %s53_s25, %s644_s2  ;;  %p649_p6 = scmp.lt.s32.totalorder %s53_s25, %s53_s25 }
  0x2f   :  { %p650_p7 = scmp.lt.s32.totalorder %s648_s20, %s644_s2 }
  0x31   :  { %p651_p8 = por %p650_p7, %p649_p6 }
  0x33   :  { %p652_p9 = pnand %p651_p8, %p645_p5 }
  0x35   :  { %655 = shalt.err (!%p652_p9)
}
  0x36   :  { %55 = dma.hbm_to_vmem [thread:$0]  %s910_s5, 16, %s53_s25, [#allocation6]  }
  0x37   :  { %s656_s22 = scalar_lea.hbm %s911_s6, 16 }
  0x38   :  { %p657_p10 = scmp.ne.s32.totalorder %s911_s6, %s656_s22  ;;  %p660_p11 = scmp.lt.u32.totalorder %s656_s22, %s911_s6 }
  0x3a   :  { %p662_p12 = pnand %p660_p11, %p657_p10 }
  0x3c   :  { %665 = shalt.err (!%p662_p12)
}
  0x3d   :  { %s666_s26 = scalar_lea.vmem %s63_s27, 16  ;;  %s670_s28 = scalar_lea.vmem %s63_s27, 32 }
  0x3e   :  { %p667_p13 = scmp.ne.s32.totalorder %s63_s27, %s666_s26  ;;  %p671_p0 = scmp.lt.s32.totalorder %s63_s27, %s63_s27 }
  0x3f   :  { %p672_p1 = scmp.lt.s32.totalorder %s670_s28, %s666_s26 }
  0x41   :  { %p673_p2 = por %p672_p1, %p671_p0 }
  0x43   :  { %p674_p3 = pnand %p673_p2, %p667_p13 }
  0x45   :  { %677 = shalt.err (!%p674_p3)
}
  0x46   :  { %65 = dma.hbm_to_vmem [thread:$0]  %s911_s6, 16, %s63_s27, [#allocation9]  }
  0x47   :  { %700 = dma.done.wait [#allocation3], 16  }
  0x48   :  { %701 = vsyncadd [#allocation3], 4294967280 }
  0x49   :  { %702 = dma.done.wait [#allocation6], 32  }
  0x4a   :  { %703 = vsyncadd [#allocation6], 4294967264 }
  0x4b   :  { %704 = dma.done.wait [#allocation9], 16  }
  0x4c   :  { %705 = vsyncadd [#allocation9], 4294967280  ;;  %v712_v0 = vmov 0.0   ;;  %vm713_vm0 = vmmov 0   ;;  %v567_v1 = vld [vmem:[%s906_s1] sm:$0xff]   ;;  %v568_v2 = vld [vmem:[%s906_s1 + $0x8] sm:$0xff]  }
  0x4d   :  { %530 = vmatprep.subr.bf16.mxu0 %v712_v0  ;;  %534 = vmatprep.mubr.msk.bf16.mxu0 %vm713_vm0, %v712_v0  ;;  %v838_v3 = vld [vmem:[%s905_s0] sm:$0xff]  ;;  %v843_v4 = vld [vmem:[%s905_s0 + $0x8] sm:$0xff]  ;;  %vm91_vm1 = vcmask 261120   ;;  %vm254_vm4 = vcmask 1041409   ;;  %vm312_vm5 = vcmask 254976   ;;  %vm428_vm8 = vcmask 130048  }
  0x4e   :  { %538 = vmatprep.subr.bf16.mxu1 %v712_v0  ;;  %542 = vmatprep.mubr.msk.bf16.mxu1 %vm713_vm0, %v712_v0  ;;  %v100_v5 = vpack.c.bf16 %v843_v4, %v838_v3  ;;  %v89_v6 = vand.u32 2147483647, %v838_v3  ;;  %v90_v8 = vand.u32 2147483647, %v843_v4  ;;  %v502_v10 = vld [vmem:[#allocation2] ss:$0 sm:$0xff] }
  0x4f   :  { %531 = vmatpush3.bf16.msra.mxu0 %v567_v1  ;;  %v506_v15 = vld [vmem:[#allocation5] ss:$0 sm:$0xff]  ;;  %v570_v25 = vld [vmem:[%s909_s4 + $0x8] sm:$0xff]   ;;  %vm472_vm9 = vcmask 25600  }
  0x50   :  { %532 = vmatprep.subr.bf16.mxu0 %v712_v0  ;;  %v92_v7 = vsel %vm91_vm1, %v89_v6, 0.0  ;;  %v95_v9 = vsel %vm91_vm1, %v90_v8, 0.0  ;;  %v569_v24 = vld [vmem:[%s909_s4] sm:$0xff]  }
  0x51   :  { %93 = vadd.xlane.f32.xlu0 %v92_v7  ;;  %539 = vmatpush3.bf16.msra.mxu1 %v569_v24 }
  0x52   :  { %540 = vmatprep.subr.bf16.mxu1 %v712_v0 }
  0x53   :  { %533 = vmatpush3.bf16.msra.mxu0 %v568_v2 }
  0x54   :  { %546 = vmatprep.subr.bf16.mxu0 %v712_v0 }
  0x55   :  { %96 = vadd.xlane.f32.xlu0 %v95_v9  ;;  %541 = vmatpush3.bf16.msra.mxu1 %v570_v25  ;;  %v507_v25 = vld [vmem:[#allocation7] ss:$0 sm:$0xff] }
  0x56   :  { %535 = vmatmul.mubr.msk.bf16.vlgmr.msra.gmra.mrb[0].mxu0 %vm91_vm1, %v100_v5  ;;  %554 = vmatprep.subr.bf16.mxu1 %v712_v0 }
  0x57   :  { %550 = vmatprep.mubr.msk.bf16.mxu0 %vm713_vm0, %v712_v0 }
  0xde   :  { %v94_v26 = vpop.xlane.xlu0 %93 }
  0xdf   :  { %vm98_vm2 = vcmp.eq.f32.partialorder %v94_v26, 0.0 }
  0xe2   :  { %v97_v27 = vpop.xlane.xlu0 %96 }
  0xe3   :  { %vm99_vm3 = vcmp.eq.f32.partialorder %v97_v27, 0.0 }
 0x129   :  { %v161_v11 = vpop.f32.mrb[0].mxu0 }
 0x12a   :  { %v162_v12 = vadd.f32 %v502_v10, %v161_v11  ;;  %v536_v13 = vpop.f32.mrb[1].mxu0 }
 0x12b   :  { %v164_v14 = vpop.f32.mrb[2].mxu0 }
 0x12c   :  { %v168_v16 = vmax.f32 %v162_v12, 0.0  ;;  %v165_v17 = vadd.f32 %v502_v10, %v164_v14  ;;  %v537_v18 = vpop.f32.mrb[3].mxu0 }
 0x12e   :  { %v169_v19 = vmax.f32 %v165_v17, 0.0  ;;  %v177_v20 = vmul.f32 %v506_v15, %v168_v16 }
 0x130   :  { %v179_v21 = vsel %vm91_vm1, %v177_v20, 0.0  ;;  %v178_v22 = vmul.f32 %v506_v15, %v169_v19 }
 0x131   :  { %180 = vadd.xlane.f32.xlu1 %v179_v21 }
 0x132   :  { %v182_v23 = vsel %vm91_vm1, %v178_v22, 0.0 }
 0x135   :  { %183 = vadd.xlane.f32.xlu1 %v182_v23 }
 0x1be   :  { %v181_v28 = vpop.xlane.xlu1 %180 }
 0x1bf   :  { %v185_v29 = vsel %vm98_vm2, -1e+09, %v181_v28 }
 0x1c0   :  { %v187_v30 = vrot.slane %v185_v29, 4 }
 0x1c2   :  { %v188_v31 = vmax.f32 %v185_v29, %v187_v30  ;;  %v184_v32 = vpop.xlane.xlu1 %183 }
 0x1c3   :  { %v186_v33 = vsel %vm99_vm3, -1e+09, %v184_v32 }
 0x1c4   :  { %v189_v34 = vrot.slane %v188_v31, 2  ;;  %v193_v35 = vrot.slane %v186_v33, 4 }
 0x1c6   :  { %v190_v36 = vmax.f32 %v188_v31, %v189_v34  ;;  %v194_v37 = vmax.f32 %v186_v33, %v193_v35 }
 0x1c8   :  { %v191_v38 = vrot.slane %v190_v36, 1  ;;  %v195_v39 = vrot.slane %v194_v37, 2 }
 0x1ca   :  { %v192_v40 = vmax.f32 %v190_v36, %v191_v38  ;;  %v196_v41 = vmax.f32 %v194_v37, %v195_v39  ;;  %v571_v37 = vld [vmem:[%s913_s8] sm:$0xff]   ;;  %v572_v38 = vld [vmem:[%s913_s8 + $0x8] sm:$0xff]  }
 0x1cb   :  { %547 = vmatpush3.bf16.msra.mxu0 %v571_v37  ;;  %v573_v39 = vld [vmem:[%s914_s9] sm:$0xff]  }
 0x1cc   :  { %v199_v42 = vsub.f32 %v185_v29, %v192_v40  ;;  %v197_v43 = vrot.slane %v196_v41, 1  ;;  %548 = vmatprep.subr.bf16.mxu0 %v712_v0 }
 0x1ce   :  { %v201_v44 = vmul.f32 1.442695, %v199_v42  ;;  %v198_v45 = vmax.f32 %v196_v41, %v197_v43 }
 0x1cf   :  { %549 = vmatpush3.bf16.msra.mxu0 %v572_v38 }
 0x1d0   :  { %574 = vpow2.f32 %v201_v44  ;;  %v200_v46 = vsub.f32 %v186_v33, %v198_v45 }
 0x1d2   :  { %v203_v47 = vmul.f32 1.442695, %v200_v46 }
 0x1d4   :  { %576 = vpow2.f32 %v203_v47 }
 0x1da   :  { %v575_v48 = vpop.eup %574 }
 0x1db   :  { %v205_v49 = vrot.slane %v575_v48, 4 }
 0x1dd   :  { %v206_v50 = vadd.f32 %v575_v48, %v205_v49 }
 0x1de   :  { %v577_v51 = vpop.eup %576 }
 0x1df   :  { %v207_v52 = vrot.slane %v206_v50, 2  ;;  %v211_v53 = vrot.slane %v577_v51, 4 }
 0x1e1   :  { %v208_v54 = vadd.f32 %v207_v52, %v206_v50  ;;  %v212_v55 = vadd.f32 %v577_v51, %v211_v53  ;;  %v512_v50 = vld [vmem:[%s912_s7] ss:$0 sm:$0xff]  ;;  %s714_s7 = smov [#allocation10]  }
 0x1e3   :  { %v209_v56 = vrot.slane %v208_v54, 1  ;;  %v213_v57 = vrot.slane %v212_v55, 2 }
 0x1e5   :  { %v210_v58 = vadd.f32 %v209_v56, %v208_v54  ;;  %v214_v59 = vadd.f32 %v213_v57, %v212_v55 }
 0x1e7   :  { %578 = vrcp.f32 %v210_v58  ;;  %v215_v60 = vrot.slane %v214_v59, 1 }
 0x1e9   :  { %v216_v61 = vadd.f32 %v215_v60, %v214_v59  ;;  %v516_v60 = vld [vmem:[%s915_s10] ss:$0 sm:$0xff]  ;;  %s491_s10 = sshll.u32 %s714_s7, 4  ;;  %s492_s10 = int_to_ptr.vmem [resolvable:$true] %s491_s10 }
 0x1ea   :  { %s678_s18 = scalar_lea.vmem %s492_s10, 32  ;;  %p683_p5 = scmp.lt.s32.totalorder %s492_s10, %s492_s10 }
 0x1eb   :  { %580 = vrcp.f32 %v216_v61  ;;  %p679_p4 = scmp.ne.s32.totalorder %s492_s10, %s678_s18  ;;  %p684_p6 = scmp.lt.s32.totalorder %s678_s18, %s678_s18 }
 0x1ed   :  { %p685_p7 = por %p684_p6, %p683_p5 }
 0x1ef   :  { %p686_p8 = pnand %p685_p7, %p679_p4 }
 0x1f1   :  { %v579_v62 = vpop.eup %578 }
 0x1f2   :  { %v218_v63 = vmul.f32 %v579_v62, %v575_v48  ;;  %v511_v48 = vld [vmem:[#allocation8] ss:$0 sm:$0xff] }
 0x1f4   :  { %v221_v1 = vmul.f32 %v218_v63, %v838_v3 }
 0x1f5   :  { %v581_v2 = vpop.eup %580 }
 0x1f6   :  { %v220_v5 = vmul.f32 %v581_v2, %v577_v51  ;;  %v223_v6 = vsel %vm91_vm1, %v221_v1, 0.0 }
 0x1f7   :  { %v224_v7 = vrot.slane %v223_v6, 4 }
 0x1f8   :  { %v222_v8 = vmul.f32 %v220_v5, %v843_v4 }
 0x1f9   :  { %v225_v9 = vadd.f32 %v224_v7, %v223_v6 }
 0x1fa   :  { %v230_v10 = vsel %vm91_vm1, %v222_v8, 0.0 }
 0x1fb   :  { %v226_v11 = vrot.slane %v225_v9, 2  ;;  %v231_v12 = vrot.slane %v230_v10, 4 }
 0x1fd   :  { %v227_v13 = vadd.f32 %v226_v11, %v225_v9  ;;  %v232_v14 = vadd.f32 %v231_v12, %v230_v10 }
 0x1ff   :  { %v228_v15 = vrot.slane %v227_v13, 1  ;;  %v233_v16 = vrot.slane %v232_v14, 2 }
 0x201   :  { %v229_v17 = vadd.f32 %v228_v15, %v227_v13  ;;  %v234_v18 = vadd.f32 %v233_v16, %v232_v14 }
 0x203   :  { %v235_v19 = vrot.slane %v234_v18, 1  ;;  %v237_v20 = vpack.c.bf16 %v229_v17, %v229_v17 }
 0x205   :  { %v236_v3 = vadd.f32 %v235_v19, %v234_v18  ;;  %v252_v22 = vunpack.c.l.b16 %v237_v20 }
 0x207   :  { %v238_v21 = vpack.c.bf16 %v236_v3, %v236_v3 }
 0x209   :  { %v253_v23 = vunpack.c.l.b16 %v238_v21 }
 0x20b   :  { %v255_v24 = vsel %vm254_vm4, %v253_v23, %v252_v22 }
 0x20c   :  { %v256_v4 = vpack.c.b16 %v255_v24, %v255_v24 }
 0x20e   :  { %543 = vmatmul.mubr.msk.bf16.vlgmr.msra.gmra.mrb[0].mxu1 %vm91_vm1, %v256_v4 }
 0x20f   :  { %556 = vmatprep.mubr.msk.bf16.mxu1 %vm713_vm0, %v712_v0  ;;  %555 = vmatpush3.bf16.msra.mxu1 %v573_v39 }
 0x2e1   :  { %v306_v26 = vpop.f32.mrb[0].mxu1 }
 0x2e2   :  { %v307_v27 = vadd.f32 %v507_v25, %v306_v26  ;;  %v544_v28 = vpop.f32.mrb[1].mxu1 }
 0x2e3   :  { %v309_v29 = vpop.f32.mrb[2].mxu1 }
 0x2e4   :  { %v545_v30 = vpop.f32.mrb[3].mxu1  ;;  %v313_v31 = vsel %vm312_vm5, %v307_v27, 0.0 }
 0x2e5   :  { %314 = vadd.xlane.f32.xlu0 %v313_v31 }
 0x372   :  { %v315_v32 = vpop.xlane.xlu0 %314 }
 0x373   :  { %v317_v33 = vmul.f32 0.03125, %v315_v32 }
 0x375   :  { %v318_v34 = vsub.f32 %v307_v27, %v317_v33 }
 0x377   :  { %v319_v35 = vmul.f32 %v318_v34, %v318_v34  ;;  %v339_v0 = vmul.f32 %v511_v48, %v318_v34 }
 0x379   :  { %v320_v36 = vsel %vm312_vm5, %v319_v35, 0.0 }
 0x37a   :  { %321 = vadd.xlane.f32.xlu1 %v320_v36 }
 0x407   :  { %v322_v40 = vpop.xlane.xlu1 %321 }
 0x408   :  { %v324_v41 = vmul.f32 0.032258064, %v322_v40 }
 0x40a   :  { %582 = vrsqrt.f32 %v324_v41  ;;  %vm327_vm6 = vcmp.eq.f32.partialorder %v324_v41, inf  ;;  %v330_v44 = vand.u32 2147483648, %v324_v41  ;;  %vm329_vm7 = vcmp.eq.f32.partialorder %v324_v41, 0.0 }
 0x414   :  { %v583_v42 = vpop.eup %582 }
 0x415   :  { %v326_v43 = vmul.f32 %v583_v42, %v324_v41 }
 0x417   :  { %v328_v45 = vsel %vm327_vm6, %v324_v41, %v326_v43 }
 0x418   :  { %v331_v46 = vsel %vm329_vm7, %v330_v44, %v328_v45 }
 0x419   :  { %v340_v47 = vadd.f32 1e-06, %v331_v46 }
 0x41b   :  { %584 = vrcp.f32 %v340_v47 }
 0x425   :  { %v585_v49 = vpop.eup %584 }
 0x426   :  { %v342_v51 = vmul.f32 %v585_v49, %v339_v0 }
 0x428   :  { %v350_v52 = vadd.f32 %v512_v50, %v342_v51 }
 0x42a   :  { %v351_v53 = vpack.c.bf16 %v350_v52, %v350_v52 }
 0x42c   :  { %551 = vmatmul.mubr.msk.bf16.vlgmr.msra.gmra.mrb[4].mxu0 %vm91_vm1, %v351_v53 }
 0x4ff   :  { %v405_v54 = vpop.f32.mrb[4].mxu0 }
 0x500   :  { %v411_v55 = vmax.f32 %v405_v54, 0.0  ;;  %v552_v56 = vpop.f32.mrb[5].mxu0 }
 0x501   :  { %v408_v57 = vpop.f32.mrb[6].mxu0 }
 0x502   :  { %v412_v58 = vpack.c.bf16 %v411_v55, %v411_v55  ;;  %v553_v59 = vpop.f32.mrb[7].mxu0 }
 0x504   :  { %557 = vmatmul.mubr.msk.bf16.vlgmr.msra.gmra.mrb[4].mxu1 %vm428_vm8, %v412_v58 }
 0x5d7   :  { %v466_v61 = vpop.f32.mrb[4].mxu1 }
 0x5d8   :  { %v467_v62 = vadd.f32 %v516_v60, %v466_v61  ;;  %v558_v63 = vpop.f32.mrb[5].mxu1 }
 0x5d9   :  { %v469_v1 = vpop.f32.mrb[6].mxu1 }
 0x5da   :  { %v559_v2 = vpop.f32.mrb[7].mxu1  ;;  %v473_v5 = vsel %vm472_vm9, %v467_v62, -inf }
 0x5db   :  { %474 = vmax.xlane.f32.xlu0 %v473_v5 }
 0x668   :  { %v475_v6 = vpop.xlane.xlu0 %474 }
 0x669   :  { %v476_v7 = vsub.f32 %v467_v62, %v475_v6 }
 0x66b   :  { %v477_v8 = vmul.f32 1.442695, %v476_v7 }
 0x66d   :  { %586 = vpow2.f32 %v477_v8 }
 0x677   :  { %v587_v9 = vpop.eup %586 }
 0x678   :  { %v479_v10 = vsel %vm472_vm9, %v587_v9, 0.0 }
 0x679   :  { %480 = vadd.xlane.f32.xlu1 %v479_v10 }
 0x706   :  { %v481_v11 = vpop.xlane.xlu1 %480 }
 0x707   :  { %588 = vrcp.f32 %v481_v11 }
 0x711   :  { %v589_v12 = vpop.eup %588 }
 0x712   :  { %v483_v13 = vmul.f32 %v589_v12, %v587_v9 }
 0x714   :  { %484 = vst.msk [vmem:[#allocation10] sm:$0x3] %vm472_vm9, %v483_v13 }
 0x715   :  { %689 = shalt.err (!%p686_p8)
}
 0x716   :  { %s690_s28 = scalar_lea.hbm %s916_s11, 32 }
 0x717   :  { %p691_p9 = scmp.ne.s32.totalorder %s916_s11, %s690_s28  ;;  %p694_p10 = scmp.lt.u32.totalorder %s690_s28, %s916_s11 }
 0x719   :  { %p696_p11 = pnand %p694_p10, %p691_p9 }
 0x71b   :  { %699 = shalt.err (!%p696_p11)
}
 0x71c   :  { %494 = dma.vmem_to_hbm [thread:$0]  %s492_s10, 32, %s916_s11, [#allocation4]  }
 0x71d   :  { %706 = dma.done.wait [#allocation4], 32  }
 0x71e   :  { %707 = vsyncadd [#allocation4], 4294967264 }
 0x71f   :  { %498 = vsyncpa [#allocation3], 1 }
 0x720   :  { %499 = vsyncpa [#allocation6], 1 }
 0x721   :  { %500 = vsyncpa [#allocation9], 1 }
 0x722   :  { %501 = vsyncpa [#allocation4], 1 }

</bundles_post_ra>
